<compile_context>
chip_gen: v7x
topology: tpu7x:2x2x1
jax: 0.10.0
libtpu: 0.0.40
codegen_flags: <defaults>
</compile_context>

<pallas_src>
import numpy as np
import jax
import jax.numpy as jnp
from jax.experimental import pallas as pl
from jax.experimental.pallas import tpu as pltpu

NEG_SLOPE = 0.01            # nn.LeakyReLU default negative_slope
N_GROUPS = 9
N_BANDS = 12
N_SPATIAL = 2
GROUP_FEATS = N_BANDS + N_SPATIAL        # 14
N_FEATS = N_GROUPS * GROUP_FEATS         # 126
HID = 10
H_ALL = N_GROUPS * HID                   # 90


def _round_up(n, m):
    return ((n + m - 1) // m) * m


def _leaky(x):
    return jnp.where(x > 0, x, NEG_SLOPE * x)


def ann_kernel(x_ref, w1bd_ref, b1t_ref, wcomb_ref, w2sp_ref, b2p_ref,
               w2b_ref, b2b_ref, o_ref):
    # x_ref: (TB, 126) flat features; weights are small and VMEM-resident.
    x = x_ref[...]

    # Shared linear1 over all 9 band groups as one block-diagonal matmul.
    h = jnp.dot(x, w1bd_ref[...], preferred_element_type=jnp.float32) \
        + b1t_ref[...]                                              # (TB, 90)
    h = _leaky(h)

    # linear2 first layer: x2-path (folded w1b * W2_x2) + spatial-path + bias.
    z = (jnp.dot(h, wcomb_ref[...], preferred_element_type=jnp.float32)
         + jnp.dot(x, w2sp_ref[...], preferred_element_type=jnp.float32)
         + b2p_ref[...])                                            # (TB, 10)
    z = _leaky(z)

    out = jnp.dot(z, w2b_ref[...], preferred_element_type=jnp.float32) \
        + b2b_ref[0, 0]                                             # (TB, 1)
    o_ref[...] = out.astype(o_ref.dtype)


def _fold_params(params):
    """Fold the per-group / interleaved structure into dense matrices.

    This is exact linear algebra (the x2 -> linear2 path has no nonlinearity
    in between); only f32 addition order changes.
    """
    w1, b1, w1b, b1b, w2, b2, w2b, b2b = params

    w1_bd = jnp.zeros((N_FEATS, H_ALL), jnp.float32)   # block-diagonal linear1
    w2_sp = jnp.zeros((N_FEATS, HID), jnp.float32)     # spatial rows of W2
    for g in range(N_GROUPS):
        r0 = g * GROUP_FEATS
        w1_bd = w1_bd.at[r0 + N_SPATIAL:r0 + GROUP_FEATS,
                         g * HID:(g + 1) * HID].set(w1)
        w2_sp = w2_sp.at[r0:r0 + N_SPATIAL].set(w2[3 * g:3 * g + 2])

    b1_t = jnp.tile(b1.reshape(1, HID), (1, N_GROUPS))              # (1, 90)

    w2_x2 = w2[2::3]                                                # (9, 10)
    # Wcomb[g*10 + h, j] = w1b[h] * w2_x2[g, j]
    w_comb = (w2_x2[:, None, :] * w1b.reshape(1, HID, 1)).reshape(H_ALL, HID)
    # bias from linear1's output bias flowing through w2_x2
    b2_p = b2.reshape(1, HID) \
        + b1b.reshape(()) * jnp.sum(w2_x2, axis=0, keepdims=True)   # (1, 10)

    return w1_bd, b1_t, w_comb, w2_sp, b2_p, w2b.reshape(HID, 1), b2b.reshape(1, 1)


def ann_forward(x, params, tb=2048):
    """x: (B, 126) float32.  Returns (B, 1) float32."""
    B = x.shape[0]
    w1_bd, b1_t, w_comb, w2_sp, b2_p, w2b, b2b = _fold_params(params)

    # Batch tile: multiple of 8 sublanes; small batches collapse to one block.
    tb = min(tb, _round_up(B, 8))
    grid = (pl.cdiv(B, tb),)

    const2 = lambda i: (0, 0)

    out = pl.pallas_call(
        ann_kernel,
        out_shape=jax.ShapeDtypeStruct((B, 1), jnp.float32),
        grid=grid,
        in_specs=[
            pl.BlockSpec((tb, N_FEATS), lambda i: (i, 0)),     # x tile
            pl.BlockSpec((N_FEATS, H_ALL), const2),            # W1 block-diag
            pl.BlockSpec((1, H_ALL), const2),                  # b1 tiled
            pl.BlockSpec((H_ALL, HID), const2),                # Wcomb
            pl.BlockSpec((N_FEATS, HID), const2),              # W2 spatial (padded)
            pl.BlockSpec((1, HID), const2),                    # b2'
            pl.BlockSpec((HID, 1), const2),                    # w2b
            pl.BlockSpec(memory_space=pltpu.MemorySpace.SMEM),  # b2b scalar
        ],
        out_specs=pl.BlockSpec((tb, 1), lambda i: (i, 0)),
        compiler_params=pltpu.CompilerParams(
            dimension_semantics=("parallel",)),
    )(x, w1_bd, b1_t, w_comb, w2_sp, b2_p, w2b, b2b)
    return out


def ref_forward(x, params):
    """Plain-JAX reference mirroring the PyTorch forward exactly."""
    w1, b1, w1b, b1b, w2, b2, w2b, b2b = params
    B = x.shape[0]
    x3d = x.reshape(B, 9, 14)
    xs = x3d[:, :, 0:2]                        # (B, 9, 2)
    xb = x3d[:, :, 2:]                         # (B, 9, 12)
    h = _leaky(xb @ w1 + b1[0])                # (B, 9, 10)
    x2 = h @ w1b + b1b[0]                      # (B, 9, 1)
    x3 = jnp.concatenate((xs, x2), axis=2).reshape(B, 27)
    z = _leaky(x3 @ w2 + b2)                   # (B, 10)
    return z @ w2b + b2b                       # (B, 1)


if __name__ == "__main__":
    key = jax.random.PRNGKey(0)
    ks = jax.random.split(key, 9)
    B = 200                                    # exercises grid > 1 + ragged tail
    x = jax.random.normal(ks[0], (B, N_FEATS), dtype=jnp.float32)

    scale = 0.1
    w1 = jax.random.normal(ks[1], (12, 10), dtype=jnp.float32) * scale
    b1 = jax.random.normal(ks[2], (1, 10), dtype=jnp.float32) * scale
    w1b = jax.random.normal(ks[3], (10, 1), dtype=jnp.float32) * scale
    b1b = jax.random.normal(ks[4], (1, 1), dtype=jnp.float32) * scale
    w2 = jax.random.normal(ks[5], (27, 10), dtype=jnp.float32) * scale
    b2 = jax.random.normal(ks[6], (1, 10), dtype=jnp.float32) * scale
    w2b = jax.random.normal(ks[7], (10, 1), dtype=jnp.float32) * scale
    b2b = jax.random.normal(ks[8], (1, 1), dtype=jnp.float32) * scale
    params = (w1, b1, w1b, b1b, w2, b2, w2b, b2b)

    out = ann_forward(x, params, tb=64)        # grid=(4,), last block ragged
    out = jax.block_until_ready(out)
    assert out.shape == (B, 1)

    ref = ref_forward(x, params)
    np.testing.assert_allclose(np.asarray(out), np.asarray(ref),
                               rtol=1e-4, atol=1e-5)
    print("KERNEL_OK")
</pallas_src>

<mosaic_0001>
module attributes {stable_mosaic.version = 11 : i64} {
  func.func @ann_kernel(%arg0: i32, %arg1: memref<64x126xf32, #tpu.memory_space<vmem>>, %arg2: memref<126x90xf32, #tpu.memory_space<vmem>>, %arg3: memref<1x90xf32, #tpu.memory_space<vmem>>, %arg4: memref<90x10xf32, #tpu.memory_space<vmem>>, %arg5: memref<126x10xf32, #tpu.memory_space<vmem>>, %arg6: memref<1x10xf32, #tpu.memory_space<vmem>>, %arg7: memref<10x1xf32, #tpu.memory_space<vmem>>, %arg8: memref<1x1xf32, #tpu.memory_space<smem>>, %arg9: memref<64x1xf32, #tpu.memory_space<vmem>>) attributes {dimension_semantics = [#tpu.dimension_semantics<parallel>], iteration_bounds = array<i64: 4>, scalar_prefetch = 0 : i64, scratch_operands = 0 : i64, tpu.core_type = #tpu.core_type<tc>, window_params = [{transform_indices = @transform_0, window_bounds = array<i64: 64, 126>}, {pipeline_mode = #tpu.pipeline_mode<synchronous>, transform_indices = @transform_1, window_bounds = array<i64: 126, 90>}, {pipeline_mode = #tpu.pipeline_mode<synchronous>, transform_indices = @transform_2, window_bounds = array<i64: 1, 90>}, {pipeline_mode = #tpu.pipeline_mode<synchronous>, transform_indices = @transform_3, window_bounds = array<i64: 90, 10>}, {pipeline_mode = #tpu.pipeline_mode<synchronous>, transform_indices = @transform_4, window_bounds = array<i64: 126, 10>}, {pipeline_mode = #tpu.pipeline_mode<synchronous>, transform_indices = @transform_5, window_bounds = array<i64: 1, 10>}, {pipeline_mode = #tpu.pipeline_mode<synchronous>, transform_indices = @transform_6, window_bounds = array<i64: 10, 1>}, {transform_indices = @transform_7, window_bounds = array<i64: 1, 1>}, {transform_indices = @transform_8, window_bounds = array<i64: 64, 1>}]} {
    %c0 = arith.constant 0 : index
    %c0_0 = arith.constant 0 : index
    %0 = vector.load %arg1[%c0, %c0_0] : memref<64x126xf32, #tpu.memory_space<vmem>>, vector<64x126xf32>
    %c0_1 = arith.constant 0 : index
    %c0_2 = arith.constant 0 : index
    %1 = vector.load %arg2[%c0_1, %c0_2] : memref<126x90xf32, #tpu.memory_space<vmem>>, vector<126x90xf32>
    %cst = arith.constant dense<0.000000e+00> : vector<64x90xf32>
    %2 = tpu.matmul %0, %1, %cst {dimension_numbers = #tpu.dot_dimension_numbers<[1], [0], [0], [1], [0, 0, 1, 1], [], []>} : vector<64x126xf32>, vector<126x90xf32>, vector<64x90xf32> -> vector<64x90xf32>
    %c0_3 = arith.constant 0 : index
    %c0_4 = arith.constant 0 : index
    %3 = vector.load %arg3[%c0_3, %c0_4] : memref<1x90xf32, #tpu.memory_space<vmem>>, vector<1x90xf32>
    %4 = vector.broadcast %3 : vector<1x90xf32> to vector<64x90xf32>
    %5 = arith.addf %2, %4 : vector<64x90xf32>
    %cst_5 = arith.constant 0.000000e+00 : f32
    %6 = vector.broadcast %cst_5 : f32 to vector<64x90xf32>
    %7 = arith.cmpf ogt, %5, %6 : vector<64x90xf32>
    %cst_6 = arith.constant 0.00999999977 : f32
    %8 = vector.broadcast %cst_6 : f32 to vector<64x90xf32>
    %9 = arith.mulf %8, %5 : vector<64x90xf32>
    %10 = arith.select %7, %5, %9 : vector<64x90xi1>, vector<64x90xf32>
    %c0_7 = arith.constant 0 : index
    %c0_8 = arith.constant 0 : index
    %11 = vector.load %arg4[%c0_7, %c0_8] : memref<90x10xf32, #tpu.memory_space<vmem>>, vector<90x10xf32>
    %cst_9 = arith.constant dense<0.000000e+00> : vector<64x10xf32>
    %12 = tpu.matmul %10, %11, %cst_9 {dimension_numbers = #tpu.dot_dimension_numbers<[1], [0], [0], [1], [0, 0, 1, 1], [], []>} : vector<64x90xf32>, vector<90x10xf32>, vector<64x10xf32> -> vector<64x10xf32>
    %c0_10 = arith.constant 0 : index
    %c0_11 = arith.constant 0 : index
    %13 = vector.load %arg5[%c0_10, %c0_11] : memref<126x10xf32, #tpu.memory_space<vmem>>, vector<126x10xf32>
    %cst_12 = arith.constant dense<0.000000e+00> : vector<64x10xf32>
    %14 = tpu.matmul %0, %13, %cst_12 {dimension_numbers = #tpu.dot_dimension_numbers<[1], [0], [0], [1], [0, 0, 1, 1], [], []>} : vector<64x126xf32>, vector<126x10xf32>, vector<64x10xf32> -> vector<64x10xf32>
    %15 = arith.addf %12, %14 : vector<64x10xf32>
    %c0_13 = arith.constant 0 : index
    %c0_14 = arith.constant 0 : index
    %16 = vector.load %arg6[%c0_13, %c0_14] : memref<1x10xf32, #tpu.memory_space<vmem>>, vector<1x10xf32>
    %17 = vector.broadcast %16 : vector<1x10xf32> to vector<64x10xf32>
    %18 = arith.addf %15, %17 : vector<64x10xf32>
    %cst_15 = arith.constant 0.000000e+00 : f32
    %19 = vector.broadcast %cst_15 : f32 to vector<64x10xf32>
    %20 = arith.cmpf ogt, %18, %19 : vector<64x10xf32>
    %cst_16 = arith.constant 0.00999999977 : f32
    %21 = vector.broadcast %cst_16 : f32 to vector<64x10xf32>
    %22 = arith.mulf %21, %18 : vector<64x10xf32>
    %23 = arith.select %20, %18, %22 : vector<64x10xi1>, vector<64x10xf32>
    %c0_17 = arith.constant 0 : index
    %c0_18 = arith.constant 0 : index
    %24 = vector.load %arg7[%c0_17, %c0_18] : memref<10x1xf32, #tpu.memory_space<vmem>>, vector<10x1xf32>
    %cst_19 = arith.constant dense<0.000000e+00> : vector<64x1xf32>
    %25 = tpu.matmul %23, %24, %cst_19 {dimension_numbers = #tpu.dot_dimension_numbers<[1], [0], [0], [1], [0, 0, 1, 1], [], []>} : vector<64x10xf32>, vector<10x1xf32>, vector<64x1xf32> -> vector<64x1xf32>
    %c0_20 = arith.constant 0 : index
    %c0_21 = arith.constant 0 : index
    %26 = memref.load %arg8[%c0_20, %c0_21] : memref<1x1xf32, #tpu.memory_space<smem>>
    %27 = vector.broadcast %26 : f32 to vector<64x1xf32>
    %28 = arith.addf %25, %27 : vector<64x1xf32>
    %c0_22 = arith.constant 0 : index
    %c0_23 = arith.constant 0 : index
    %29 = vector.load %arg9[%c0_22, %c0_23] : memref<64x1xf32, #tpu.memory_space<vmem>>, vector<64x1xf32>
    tpu.vector_store %arg9[%c0_22, %c0_23], %28 {strides = array<i32>} : memref<64x1xf32, #tpu.memory_space<vmem>>, vector<64x1xf32>,
    return
  }
  func.func @transform_0(%arg0: i32) -> (i32, i32) {
    %c0_i32 = arith.constant 0 : i32
    %c0_i32_0 = arith.constant 0 : i32
    return %arg0, %c0_i32 : i32, i32
  }
  func.func @transform_1(%arg0: i32) -> (i32, i32) {
    %c0_i32 = arith.constant 0 : i32
    %c0_i32_0 = arith.constant 0 : i32
    %c0_i32_1 = arith.constant 0 : i32
    return %c0_i32, %c0_i32_0 : i32, i32
  }
  func.func @transform_2(%arg0: i32) -> (i32, i32) {
    %c0_i32 = arith.constant 0 : i32
    %c0_i32_0 = arith.constant 0 : i32
    %c0_i32_1 = arith.constant 0 : i32
    return %c0_i32, %c0_i32_0 : i32, i32
  }
  func.func @transform_3(%arg0: i32) -> (i32, i32) {
    %c0_i32 = arith.constant 0 : i32
    %c0_i32_0 = arith.constant 0 : i32
    %c0_i32_1 = arith.constant 0 : i32
    return %c0_i32, %c0_i32_0 : i32, i32
  }
  func.func @transform_4(%arg0: i32) -> (i32, i32) {
    %c0_i32 = arith.constant 0 : i32
    %c0_i32_0 = arith.constant 0 : i32
    %c0_i32_1 = arith.constant 0 : i32
    return %c0_i32, %c0_i32_0 : i32, i32
  }
  func.func @transform_5(%arg0: i32) -> (i32, i32) {
    %c0_i32 = arith.constant 0 : i32
    %c0_i32_0 = arith.constant 0 : i32
    %c0_i32_1 = arith.constant 0 : i32
    return %c0_i32, %c0_i32_0 : i32, i32
  }
  func.func @transform_6(%arg0: i32) -> (i32, i32) {
    %c0_i32 = arith.constant 0 : i32
    %c0_i32_0 = arith.constant 0 : i32
    %c0_i32_1 = arith.constant 0 : i32
    return %c0_i32, %c0_i32_0 : i32, i32
  }
  func.func @transform_7(%arg0: i32) -> (i32, i32) {
    %c0_i32 = arith.constant 0 : i32
    %c0_i32_0 = arith.constant 0 : i32
    %c0_i32_1 = arith.constant 0 : i32
    return %c0_i32, %c0_i32_0 : i32, i32
  }
  func.func @transform_8(%arg0: i32) -> (i32, i32) {
    %c0_i32 = arith.constant 0 : i32
    %c0_i32_0 = arith.constant 0 : i32
    return %arg0, %c0_i32 : i32, i32
  }
}

</mosaic_0001>

<bundles_post_ra>
// kernel: tpu_custom_call.1
= control target key start
LH: loop header
LB: loop body
LE: loop exit
PB: predicated region body
PF: predicated region fallthrough
CT: control target
= control target key end

     0   :  { %s2149_s0 = inlined_call_operand.vmem [shape: f32[200,126], index: 0, kind: input, shape index: {}]   ;;  %s2150_s1 = inlined_call_operand.vmem [shape: f32[126,90], index: 1, kind: input, shape index: {}]   ;;  %s2151_s2 = inlined_call_operand.vmem [shape: f32[1,90], index: 2, kind: input, shape index: {}]   ;;  %s2152_s3 = inlined_call_operand.vmem [shape: f32[90,10], index: 3, kind: input, shape index: {}]   ;;  %s2153_s4 = inlined_call_operand.vmem [shape: f32[126,10], index: 4, kind: input, shape index: {}]   ;;  %s2154_s5 = inlined_call_operand.vmem [shape: f32[1,10], index: 5, kind: input, shape index: {}]   ;;  %s2155_s6 = inlined_call_operand.vmem [shape: f32[10,1], index: 6, kind: input, shape index: {}]   ;;  %s2156_s7 = inlined_call_operand.<no memory space> [shape: f32[1,1], index: 7, kind: input, shape index: {}]   ;;  %s2157_s8 = inlined_call_operand.vmem [shape: f32[200,1], index: 8, kind: output, shape index: {}]  }
   0x1   :  { %13 = sst [smem:[#allocation2]] %s2156_s7 }
   0x2   :  { %s1832_s29 = smov 0   ;;  %s1834_s30 = smov 0  }
   0x3   :  { %s1836_s9 = smov 0  }
   0x4 LB: > { %s1845_s7 = sadd.s32 4294967295, %s1749_s9   ;;  %s1847_s10 = sadd.s32 1, %s1749_s9   ;;  %s1749_s9 = sphi %s1836_s9, %s2166_s9   ;;  %s1745_s30 = sphi %s1834_s30, %s2165_s30   ;;  %s1741_s29 = sphi %s1832_s29, %s2164_s29  }
   0x5   : > { %s196_s11 = ssub.s32 %s1749_s9, %s1847_s10  ;;  %s199_s12 = sadd.s32 1, %s1745_s30 }
   0x6   : > { %p197_p0 = scmp.eq.s32.totalorder %s196_s11, 0  ;;  %p209_p1 = scmp.ne.s32.totalorder %s1745_s30, %s1741_s29 }
   0x7   : > { %p210_p2 = scmp.eq.s32.totalorder %s1845_s7, 3  ;;  %p1218_p3 = scmp.ge.s32.totalorder %s1749_s9, 1 }
   0x8   : > { %s1855_s13 = scalar_select %p197_p0, %s1745_s30, %s199_s12  }
   0x9   : > { %p1857_p4 = por %p210_p2, %p209_p1  ;;  %p272_p5 = scmp.lt.s32.totalorder %s1749_s9, 5 }
   0xb   : > { %p273_p6 = pnand %p1218_p3, %p272_p5 }
   0xc   : > { %v336_v0 = vld [vmem:[%s2150_s1] sm:$0xff] (!%p273_p6)  ;;  %v337_v1 = vld [vmem:[%s2150_s1 + $0x8] sm:$0xff] (!%p273_p6)  ;;  %v338_v2 = vld [vmem:[%s2150_s1 + $0x10] sm:$0xff] (!%p273_p6)  ;;  %s1871_s21 = sshll.u32 (!%p273_p6), %s1845_s7, 3  ;;  %vm359_vm0 = vcmask (!%p273_p6), 1031168   ;;  %vm384_vm1 = vcmask (!%p273_p6), 1045504  }
   0xd   : > { %276 = sbr.rel (%p273_p6) target bundleno = 762 (0x2fa), region = 52  ;;  %v1498_v3 = vpack.c.bf16 (!%p273_p6), %v337_v1, %v336_v0  ;;  %v339_v4 = vld [vmem:[%s2150_s1 + $0x18] sm:$0xff] (!%p273_p6)  ;;  %p314_p7 = scmp.lt.s32.totalorder (!%p273_p6), %s1871_s21, 24  ;;  %v340_v6 = vld [vmem:[%s2150_s1 + $0x20] sm:$0xff] (!%p273_p6)  ;;  %v341_v7 = vld [vmem:[%s2150_s1 + $0x28] sm:$0xff] (!%p273_p6)  ;;  %vm1783_vm2 = vmmov (!%p273_p6), 1  }
   0xe   : > { %v1502_v5 = vpack.c.bf16 (!%p273_p6), %v339_v4, %v338_v2  ;;  %v1506_v8 = vpack.c.bf16 (!%p273_p6), %v341_v7, %v340_v6  ;;  %v342_v9 = vld [vmem:[%s2150_s1 + $0x30] sm:$0xff] (!%p273_p6)  ;;  %v343_v10 = vld [vmem:[%s2150_s1 + $0x38] sm:$0xff] (!%p273_p6)  ;;  %v529_v11 = vld [vmem:[%s2153_s4] sm:$0xff] (!%p273_p6)  ;;  %vm678_vm4 = vcmask (!%p273_p6), 1041408   ;;  %vm653_vm8 = vcmask (!%p273_p6), 736256   ;;  %s306_s25 = sand.u32 (!%p273_p6), 1, %s1741_s29  }
   0xf   : > { %1499 = vmatprep.subr.bf16.mxu0 (!%p273_p6), %v1498_v3  ;;  %v530_v12 = vld [vmem:[%s2153_s4 + $0x8] sm:$0xff] (!%p273_p6)  ;;  %v531_v13 = vld [vmem:[%s2153_s4 + $0x10] sm:$0xff] (!%p273_p6)  ;;  %v532_v14 = vld [vmem:[%s2153_s4 + $0x18] sm:$0xff] (!%p273_p6)  ;;  %v1510_v18 = vpack.c.bf16 (!%p273_p6), %v343_v10, %v342_v9  ;;  %s1219_s26 = sshll.u32 (!%p273_p6), %s306_s25, 6 }
  0x10   : > { %1501 = vmatpush3.bf16.msra.mxu0 (!%p273_p6), %v1498_v3  ;;  %v1532_v16 = vpack.c.bf16 (!%p273_p6), %v530_v12, %v529_v11  ;;  %v1536_v17 = vpack.c.bf16 (!%p273_p6), %v532_v14, %v531_v13  ;;  %v533_v19 = vld [vmem:[%s2153_s4 + $0x20] sm:$0xff] (!%p273_p6)  ;;  %v345_v21 = vld [vmem:[%s2150_s1 + $0x48] sm:$0xff] (!%p273_p6)  ;;  %v535_v24 = vld [vmem:[%s2153_s4 + $0x30] sm:$0xff] (!%p273_p6)  ;;  %s2070_s27 = scalar_lea.vmem (!%p273_p6), [#allocation3], %s1219_s26  }
  0x11   : > { %1503 = vmatprep.subr.bf16.mxu0 (!%p273_p6), %v1502_v5  ;;  %v344_v20 = vld [vmem:[%s2150_s1 + $0x40] sm:$0xff] (!%p273_p6)  ;;  %v534_v22 = vld [vmem:[%s2153_s4 + $0x28] sm:$0xff] (!%p273_p6)  ;;  %v536_v25 = vld [vmem:[%s2153_s4 + $0x38] sm:$0xff] (!%p273_p6) }
  0x12   : > { %1533 = vmatprep.subr.bf16.mxu1 (!%p273_p6), %v1532_v16  ;;  %v1540_v23 = vpack.c.bf16 (!%p273_p6), %v534_v22, %v533_v19  ;;  %v1514_v26 = vpack.c.bf16 (!%p273_p6), %v345_v21, %v344_v20  ;;  %v346_v27 = vld [vmem:[%s2150_s1 + $0x50] sm:$0xff] (!%p273_p6)  ;;  %v347_v28 = vld [vmem:[%s2150_s1 + $0x58] sm:$0xff] (!%p273_p6)  ;;  %v1544_v29 = vpack.c.bf16 (!%p273_p6), %v536_v25, %v535_v24  ;;  %v537_v30 = vld [vmem:[%s2153_s4 + $0x40] sm:$0xff] (!%p273_p6) }
  0x13   : > { %1535 = vmatpush3.bf16.msra.mxu1 (!%p273_p6), %v1532_v16  ;;  %v538_v31 = vld [vmem:[%s2153_s4 + $0x48] sm:$0xff] (!%p273_p6)  ;;  %v1518_v32 = vpack.c.bf16 (!%p273_p6), %v347_v28, %v346_v27  ;;  %v348_v33 = vld [vmem:[%s2150_s1 + $0x60] sm:$0xff] (!%p273_p6)  ;;  %v539_v36 = vld [vmem:[%s2153_s4 + $0x50] sm:$0xff] (!%p273_p6) }
  0x14   : > { %s315_s28 = scalar_select %p314_p7, %s1871_s21, 24  ;;  %1505 = vmatpush3.bf16.msra.mxu0 %v1502_v5  ;;  %1537 = vmatprep.subr.bf16.mxu1 %v1536_v17  ;;  %v349_v34 = vld [vmem:[%s2150_s1 + $0x68] sm:$0xff]  ;;  %v1548_v35 = vpack.c.bf16 %v538_v31, %v537_v30  ;;  %v540_v37 = vld [vmem:[%s2153_s4 + $0x58] sm:$0xff]  ;;  %v350_v39 = vld [vmem:[%s2150_s1 + $0x70] sm:$0xff] }
  0x15   : > { %1507 = vmatprep.subr.bf16.mxu0 %v1506_v8  ;;  %v1522_v38 = vpack.c.bf16 %v349_v34, %v348_v33  ;;  %v351_v40 = vld [vmem:[%s2150_s1 + $0x78] sm:$0x3f]  ;;  %v1552_v41 = vpack.c.bf16 %v540_v37, %v539_v36  ;;  %v541_v42 = vld [vmem:[%s2153_s4 + $0x60] sm:$0xff]  ;;  %v542_v43 = vld [vmem:[%s2153_s4 + $0x68] sm:$0xff]  ;;  %s980_s29 = ssub.s32 (%p1857_p4), 25, %s1871_s21 }
  0x16   : > { %s1221_s16 = sshll.u32 %s315_s28, 3  ;;  %v1526_v44 = vpack.c.bf16 %v351_v40, %v350_v39  ;;  %vm1965_vm3 = vmpackc.low %vm384_vm1, %vm1783_vm2  ;;  %v1556_v46 = vpack.c.bf16 %v542_v43, %v541_v42  ;;  %v543_v47 = vld [vmem:[%s2153_s4 + $0x70] sm:$0xff]  ;;  %v544_v48 = vld [vmem:[%s2153_s4 + $0x78] sm:$0x3f]  ;;  %vm830_vm1 = vcmask 80896   ;;  %s1277_s28 = sshll.u32 (%p1857_p4), %s1845_s7, 6 }
  0x17   : > { %s1896_s22 = scalar_lea.vmem %s2149_s0, %s1221_s16  ;;  %1539 = vmatpush3.bf16.msra.mxu1 %v1536_v17  ;;  %v1560_v49 = vpack.c.bf16 %v544_v48, %v543_v47  ;;  %v517_v51 = vld [vmem:[%s2152_s3] sm:$0xff]  ;;  %v518_v52 = vld [vmem:[%s2152_s3 + $0x8] sm:$0xff]  ;;  %v519_v56 = vld [vmem:[%s2152_s3 + $0x10] sm:$0xff]  ;;  %p981_p8 = scmp.lt.s32.totalorder (%p1857_p4), %s980_s29, 8 }
  0x18   : > { %v328_v15 = vld [vmem:[%s1896_s22] sm:$0xff]  ;;  %1509 = vmatpush3.bf16.msra.mxu0 %v1506_v8  ;;  %1541 = vmatprep.subr.bf16.mxu1 %v1540_v23  ;;  %v329_v50 = vld [vmem:[%s1896_s22 + $0x8] sm:$0xff]  ;;  %v330_v53 = vld [vmem:[%s1896_s22 + $0x10] sm:$0xff]  ;;  %v1566_v54 = vpack.c.bf16 %v518_v52, %v517_v51  ;;  %s2095_s12 = scalar_lea.vmem (%p1857_p4), %s2157_s8, %s1277_s28  }
  0x19   : > { %1390 = vmatprep.mubr.msk.f32.mxu0 %vm359_vm0, %v328_v15  ;;  %1434 = vmatprep.mubr.msk.f32.mxu1 %vm359_vm0, %v328_v15  ;;  %v331_v55 = vld [vmem:[%s1896_s22 + $0x18] sm:$0xff]  ;;  %v332_v58 = vld [vmem:[%s1896_s22 + $0x20] sm:$0xff]  ;;  %v333_v60 = vld [vmem:[%s1896_s22 + $0x28] sm:$0xff] }
  0x1a   : > { %1511 = vmatprep.subr.bf16.mxu0 %v1510_v18  ;;  %v520_v57 = vld [vmem:[%s2152_s3 + $0x18] sm:$0xff]  ;;  %v521_v61 = vld [vmem:[%s2152_s3 + $0x20] sm:$0xff]  ;;  %v522_v62 = vld [vmem:[%s2152_s3 + $0x28] sm:$0xff] }
  0x1b   : > { %1543 = vmatpush3.bf16.msra.mxu1 %v1540_v23  ;;  %v1570_v59 = vpack.c.bf16 %v520_v57, %v519_v56  ;;  %v334_v63 = vld [vmem:[%s1896_s22 + $0x30] sm:$0xff]  ;;  %v1574_v0 = vpack.c.bf16 %v522_v62, %v521_v61  ;;  %v335_v1 = vld [vmem:[%s1896_s22 + $0x38] sm:$0xff]  ;;  %v525_v5 = vld [vmem:[%s2152_s3 + $0x40] sm:$0xff]  ;;  %s828_s22 = sld [smem:[#allocation2]] }
  0x1c   : > { %1513 = vmatpush3.bf16.msra.mxu0 %v1510_v18  ;;  %1545 = vmatprep.subr.bf16.mxu1 %v1544_v29  ;;  %v523_v2 = vld [vmem:[%s2152_s3 + $0x30] sm:$0xff]  ;;  %v524_v3 = vld [vmem:[%s2152_s3 + $0x38] sm:$0xff]  ;;  %v526_v6 = vld [vmem:[%s2152_s3 + $0x48] sm:$0xff] }
  0x1d   : > { %1515 = vmatprep.subr.bf16.mxu0 %v1514_v26  ;;  %v1578_v4 = vpack.c.bf16 %v524_v3, %v523_v2  ;;  %v1582_v7 = vpack.c.bf16 %v526_v6, %v525_v5  ;;  %v527_v8 = vld [vmem:[%s2152_s3 + $0x50] sm:$0xff]  ;;  %v528_v9 = vld [vmem:[%s2152_s3 + $0x58] sm:$0x3]  ;;  %vm1587_vm5 = vmpackc.low %vm678_vm4, %vm1783_vm2 }
  0x1e   : > { %v1586_v10 = vpack.c.bf16 %v528_v9, %v527_v8  ;;  %v826_v11 = vld [vmem:[%s2155_s6] sm:$0xff]  ;;  %v827_v12 = vld [vmem:[%s2155_s6 + $0x8] sm:$0x3] }
  0x1f   : > { %1547 = vmatpush3.bf16.msra.mxu1 %v1544_v29  ;;  %v1592_v13 = vpack.c.bf16 %v827_v12, %v826_v11  ;;  %v1222_v14 = vld [vmem:[%s2151_s2] ss:$0 sm:$0xff] }
  0x20   : > { %1517 = vmatpush3.bf16.msra.mxu0 %v1514_v26  ;;  %1549 = vmatprep.subr.bf16.mxu1 %v1548_v35  ;;  %v1250_v47 = vld [vmem:[%s2154_s5] ss:$0 sm:$0xff] }
  0x21   : > { %1519 = vmatprep.subr.bf16.mxu0 %v1518_v32 }
  0x23   : > { %1551 = vmatpush3.bf16.msra.mxu1 %v1548_v35 }
  0x24   : > { %1521 = vmatpush3.bf16.msra.mxu0 %v1518_v32  ;;  %1553 = vmatprep.subr.bf16.mxu1 %v1552_v41 }
  0x25   : > { %1523 = vmatprep.subr.bf16.mxu0 %v1522_v38 }
  0x27   : > { %1555 = vmatpush3.bf16.msra.mxu1 %v1552_v41 }
  0x28   : > { %1525 = vmatpush3.bf16.msra.mxu0 %v1522_v38  ;;  %1557 = vmatprep.subr.bf16.mxu1 %v1556_v46 }
  0x29   : > { %1528 = vmatprep.subr.msk.bf16.mxu0 %vm1965_vm3, %v1526_v44 }
  0x2b   : > { %1559 = vmatpush3.bf16.msra.mxu1 %v1556_v46 }
  0x2c   : > { %1531 = vmatpush3.bf16.msk.msra.mxu0 %vm1965_vm3, %v1526_v44  ;;  %1562 = vmatprep.subr.msk.bf16.mxu1 %vm1965_vm3, %v1560_v49 }
  0x2d   : > { %1594 = vmatprep.subr.msk.bf16.mxu0 %vm1587_vm5, %v1592_v13 }
  0x2f   : > { %1391 = vmatmul.mubr.msk.f32.vlgmr.msra.gmra.mrb[0].mxu0 %vm359_vm0, %v329_v50  ;;  %1565 = vmatpush3.bf16.msk.msra.mxu1 %vm1965_vm3, %v1560_v49 }
  0x30   : > { %1393 = vmatprep.mubr.msk.f32.mxu0 %vm359_vm0, %v330_v53  ;;  %1567 = vmatprep.subr.bf16.mxu1 %v1566_v54 }
  0x31   : > { %1597 = vmatpush3.bf16.msk.msra.mxu0 %vm1587_vm5, %v1592_v13 }
  0x32   : > { %1435 = vmatmul.mubr.msk.f32.vlgmr.msra.gmra.mrb[0].mxu1 %vm359_vm0, %v329_v50 }
  0x33   : > { %1394 = vmatmul.mubr.msk.f32.gmra.mrb[2].mxu0 %vm359_vm0, %v331_v55  ;;  %1569 = vmatpush3.bf16.msra.mxu1 %v1566_v54 }
  0x34   : > { %1396 = vmatprep.mubr.msk.f32.mxu0 %vm359_vm0, %v332_v58  ;;  %1437 = vmatprep.mubr.msk.f32.mxu1 %vm359_vm0, %v330_v53 }
  0x35   : > { %1571 = vmatprep.subr.bf16.mxu1 %v1570_v59 }
  0x36   : > { %1438 = vmatmul.mubr.msk.f32.gmra.mrb[2].mxu1 %vm359_vm0, %v331_v55 }
  0x37   : > { %1397 = vmatmul.mubr.msk.f32.gmra.mrb[4].mxu0 %vm359_vm0, %v333_v60  ;;  %1573 = vmatpush3.bf16.msra.mxu1 %v1570_v59 }
  0x38   : > { %1399 = vmatprep.mubr.msk.f32.mxu0 %vm359_vm0, %v334_v63  ;;  %1440 = vmatprep.mubr.msk.f32.mxu1 %vm359_vm0, %v332_v58 }
  0x39   : > { %1575 = vmatprep.subr.bf16.mxu1 %v1574_v0 }
  0x3a   : > { %1441 = vmatmul.mubr.msk.f32.gmra.mrb[4].mxu1 %vm359_vm0, %v333_v60 }
  0x3b   : > { %1400 = vmatmul.mubr.msk.f32.gmra.mrb[6].mxu0 %vm359_vm0, %v335_v1  ;;  %1577 = vmatpush3.bf16.msra.mxu1 %v1574_v0 }
  0x3c   : > { %1443 = vmatprep.mubr.msk.f32.mxu1 %vm359_vm0, %v334_v63  ;;  %1579 = vmatprep.subr.bf16.mxu1 %v1578_v4 }
  0x3e   : > { %1444 = vmatmul.mubr.msk.f32.gmra.mrb[6].mxu1 %vm359_vm0, %v335_v1 }
  0x3f   : > { %1581 = vmatpush3.bf16.msra.mxu1 %v1578_v4 }
  0x40   : > { %1583 = vmatprep.subr.bf16.mxu1 %v1582_v7 }
  0x43   : > { %1585 = vmatpush3.bf16.msra.mxu1 %v1582_v7 }
  0x44   : > { %1588 = vmatprep.subr.msk.bf16.mxu1 %vm1587_vm5, %v1586_v10 }
  0x47   : > { %1591 = vmatpush3.bf16.msk.msra.mxu1 %vm1587_vm5, %v1586_v10 }
 0x102   : > { %v1392_v15 = vpop.f32.mrb[0].mxu0 }
 0x103   : > { %v460_v16 = vadd.f32 %v1392_v15, %v1222_v14  ;;  %v454_v17 = vpop.f32.mrb[1].mxu0 }
 0x104   : > { %v455_v18 = vadd.f32 %v1222_v14, %v454_v17 }
 0x105   : > { %v502_v19 = vmul.f32 0.01, %v460_v16  ;;  %vm494_vm6 = vcmp.gt.f32.partialorder %v460_v16, 0.0 }
 0x106   : > { %vm493_vm7 = vcmp.gt.f32.partialorder %v455_v18, 0.0  ;;  %v501_v20 = vmul.f32 0.01, %v455_v18  ;;  %v1395_v21 = vpop.f32.mrb[2].mxu0 }
 0x107   : > { %v470_v22 = vadd.f32 %v1395_v21, %v1222_v14  ;;  %v464_v23 = vpop.f32.mrb[3].mxu0  ;;  %v510_v26 = vsel %vm494_vm6, %v460_v16, %v502_v19  ;;  %v829_v16 = vstv %s828_s22 }
 0x108   : > { %v465_v24 = vadd.f32 %v1222_v14, %v464_v23  ;;  %v509_v25 = vsel %vm493_vm7, %v455_v18, %v501_v20 }
 0x109   : > { %v504_v27 = vmul.f32 0.01, %v470_v22  ;;  %1470 = vmatprep.mubr.msk.f32.mxu1 %vm653_vm8, %v509_v25  ;;  %vm496_vm9 = vcmp.gt.f32.partialorder %v470_v22, 0.0 }
 0x10a   : > { %vm495_vm10 = vcmp.gt.f32.partialorder %v465_v24, 0.0  ;;  %v503_v28 = vmul.f32 0.01, %v465_v24  ;;  %v1398_v29 = vpop.f32.mrb[4].mxu0  ;;  %1471 = vmatmul.mubr.msk.f32.vlgmr.msra.gmra.mrb[0].mxu1 %vm653_vm8, %v510_v26 }
 0x10b   : > { %v480_v30 = vadd.f32 %v1398_v29, %v1222_v14  ;;  %v474_v31 = vpop.f32.mrb[5].mxu0  ;;  %v512_v35 = vsel %vm496_vm9, %v470_v22, %v504_v27 }
 0x10c   : > { %v475_v32 = vadd.f32 %v1222_v14, %v474_v31  ;;  %v511_v33 = vsel %vm495_vm10, %v465_v24, %v503_v28 }
 0x10d   : > { %v506_v34 = vmul.f32 0.01, %v480_v30  ;;  %1473 = vmatprep.mubr.msk.f32.mxu1 %vm653_vm8, %v511_v33  ;;  %vm498_vm11 = vcmp.gt.f32.partialorder %v480_v30, 0.0 }
 0x10e   : > { %vm497_vm12 = vcmp.gt.f32.partialorder %v475_v32, 0.0  ;;  %v505_v36 = vmul.f32 0.01, %v475_v32  ;;  %v1401_v37 = vpop.f32.mrb[6].mxu0  ;;  %1474 = vmatmul.mubr.msk.f32.gmra.mrb[2].mxu1 %vm653_vm8, %v512_v35 }
 0x10f   : > { %v490_v38 = vadd.f32 %v1401_v37, %v1222_v14  ;;  %v484_v39 = vpop.f32.mrb[7].mxu0  ;;  %v514_v43 = vsel %vm498_vm11, %v480_v30, %v506_v34 }
 0x110   : > { %v485_v40 = vadd.f32 %v1222_v14, %v484_v39  ;;  %v513_v41 = vsel %vm497_vm12, %v475_v32, %v505_v36 }
 0x111   : > { %v508_v42 = vmul.f32 0.01, %v490_v38  ;;  %1476 = vmatprep.mubr.msk.f32.mxu1 %vm653_vm8, %v513_v41  ;;  %vm500_vm13 = vcmp.gt.f32.partialorder %v490_v38, 0.0 }
 0x112   : > { %vm499_vm14 = vcmp.gt.f32.partialorder %v485_v40, 0.0  ;;  %v507_v44 = vmul.f32 0.01, %v485_v40  ;;  %1477 = vmatmul.mubr.msk.f32.gmra.mrb[4].mxu1 %vm653_vm8, %v514_v43 }
 0x113   : > { %v516_v46 = vsel %vm500_vm13, %v490_v38, %v508_v42 }
 0x114   : > { %v515_v45 = vsel %vm499_vm14, %v485_v40, %v507_v44 }
 0x115   : > { %1479 = vmatprep.mubr.msk.f32.mxu1 %vm653_vm8, %v515_v45 }
 0x116   : > { %1480 = vmatmul.mubr.msk.f32.gmra.mrb[6].mxu1 %vm653_vm8, %v516_v46  ;;  %vm963_vm8 = vcmask 7168  }
 0x1dd   : > { %v1472_v48 = vpop.f32.mrb[0].mxu1 }
 0x1de   : > { %v795_v49 = vadd.f32 %v1472_v48, %v1250_v47  ;;  %v748_v50 = vpop.f32.mrb[1].mxu1 }
 0x1df   : > { %v794_v51 = vadd.f32 %v1250_v47, %v748_v50 }
 0x1e0   : > { %v811_v52 = vmul.f32 0.01, %v795_v49  ;;  %vm803_vm15 = vcmp.gt.f32.partialorder %v795_v49, 0.0 }
 0x1e1   : > { %vm802_vm0 = vcmp.gt.f32.partialorder %v794_v51, 0.0  ;;  %v810_v53 = vmul.f32 0.01, %v794_v51  ;;  %v1475_v54 = vpop.f32.mrb[2].mxu1 }
 0x1e2   : > { %v797_v55 = vadd.f32 %v1475_v54, %v1250_v47  ;;  %v758_v56 = vpop.f32.mrb[3].mxu1  ;;  %v819_v59 = vsel %vm803_vm15, %v795_v49, %v811_v52 }
 0x1e3   : > { %v796_v57 = vadd.f32 %v1250_v47, %v758_v56  ;;  %v818_v58 = vsel %vm802_vm0, %v794_v51, %v810_v53 }
 0x1e4   : > { %v813_v60 = vmul.f32 0.01, %v797_v55  ;;  %1486 = vmatprep.mubr.msk.f32.mxu0 %vm830_vm1, %v818_v58  ;;  %vm805_vm2 = vcmp.gt.f32.partialorder %v797_v55, 0.0 }
 0x1e5   : > { %vm804_vm3 = vcmp.gt.f32.partialorder %v796_v57, 0.0  ;;  %v812_v61 = vmul.f32 0.01, %v796_v57  ;;  %v1478_v62 = vpop.f32.mrb[4].mxu1  ;;  %1487 = vmatmul.mubr.msk.f32.vlgmr.msra.gmra.mrb[8].mxu0 %vm830_vm1, %v819_v59 }
 0x1e6   : > { %v799_v63 = vadd.f32 %v1478_v62, %v1250_v47  ;;  %v768_v0 = vpop.f32.mrb[5].mxu1  ;;  %v821_v4 = vsel %vm805_vm2, %v797_v55, %v813_v60 }
 0x1e7   : > { %v798_v1 = vadd.f32 %v1250_v47, %v768_v0  ;;  %v820_v2 = vsel %vm804_vm3, %v796_v57, %v812_v61 }
 0x1e8   : > { %v815_v3 = vmul.f32 0.01, %v799_v63  ;;  %1489 = vmatprep.mubr.msk.f32.mxu0 %vm830_vm1, %v820_v2  ;;  %vm807_vm4 = vcmp.gt.f32.partialorder %v799_v63, 0.0 }
 0x1e9   : > { %vm806_vm5 = vcmp.gt.f32.partialorder %v798_v1, 0.0  ;;  %v814_v5 = vmul.f32 0.01, %v798_v1  ;;  %v1481_v6 = vpop.f32.mrb[6].mxu1  ;;  %1490 = vmatmul.mubr.msk.f32.gmra.mrb[10].mxu0 %vm830_vm1, %v821_v4 }
 0x1ea   : > { %v801_v7 = vadd.f32 %v1481_v6, %v1250_v47  ;;  %v778_v8 = vpop.f32.mrb[7].mxu1  ;;  %v823_v12 = vsel %vm807_vm4, %v799_v63, %v815_v3 }
 0x1eb   : > { %v800_v9 = vadd.f32 %v1250_v47, %v778_v8  ;;  %v822_v10 = vsel %vm806_vm5, %v798_v1, %v814_v5 }
 0x1ec   : > { %v817_v11 = vmul.f32 0.01, %v801_v7  ;;  %1492 = vmatprep.mubr.msk.f32.mxu0 %vm830_vm1, %v822_v10  ;;  %vm809_vm6 = vcmp.gt.f32.partialorder %v801_v7, 0.0 }
 0x1ed   : > { %vm808_vm7 = vcmp.gt.f32.partialorder %v800_v9, 0.0  ;;  %v816_v13 = vmul.f32 0.01, %v800_v9  ;;  %1493 = vmatmul.mubr.msk.f32.gmra.mrb[12].mxu0 %vm830_vm1, %v823_v12 }
 0x1ee   : > { %v825_v15 = vsel %vm809_vm6, %v801_v7, %v817_v11 }
 0x1ef   : > { %v824_v14 = vsel %vm808_vm7, %v800_v9, %v816_v13 }
 0x1f0   : > { %1495 = vmatprep.mubr.msk.f32.mxu0 %vm830_vm1, %v824_v14 }
 0x1f1   : > { %1496 = vmatmul.mubr.msk.f32.gmra.mrb[14].mxu0 %vm830_vm1, %v825_v15 }
 0x2b8   : > { %v1488_v17 = vpop.f32.mrb[8].mxu0 }
 0x2b9   : > { %v930_v18 = vadd.f32 %v1488_v17, %v829_v16  ;;  %v924_v19 = vpop.f32.mrb[9].mxu0 }
 0x2ba   : > { %v925_v20 = vadd.f32 %v924_v19, %v829_v16 }
 0x2bb   : > { %965 = vst.msk [vmem:[%s2070_s27 + $0x8] sm:$0xff] %vm963_vm8, %v930_v18 }
 0x2bc   : > { %964 = vst.msk [vmem:[%s2070_s27] sm:$0xff] %vm963_vm8, %v925_v20  ;;  %v1491_v21 = vpop.f32.mrb[10].mxu0 }
 0x2bd   : > { %v940_v22 = vadd.f32 %v1491_v21, %v829_v16  ;;  %v934_v23 = vpop.f32.mrb[11].mxu0 }
 0x2be   : > { %v935_v24 = vadd.f32 %v934_v23, %v829_v16 }
 0x2bf   : > { %967 = vst.msk [vmem:[%s2070_s27 + $0x18] sm:$0xff] %vm963_vm8, %v940_v22 }
 0x2c0   : > { %966 = vst.msk [vmem:[%s2070_s27 + $0x10] sm:$0xff] %vm963_vm8, %v935_v24  ;;  %v1494_v25 = vpop.f32.mrb[12].mxu0 }
 0x2c1   : > { %v950_v26 = vadd.f32 %v1494_v25, %v829_v16  ;;  %v944_v27 = vpop.f32.mrb[13].mxu0 }
 0x2c2   : > { %v945_v28 = vadd.f32 %v944_v27, %v829_v16  ;;  %978 = sbr.rel (!%p1857_p4) target bundleno = 762 (0x2fa), region = 56 }
 0x2c3   : > { %969 = vst.msk [vmem:[%s2070_s27 + $0x28] sm:$0xff] %vm963_vm8, %v950_v26 }
 0x2c4   : > { %968 = vst.msk [vmem:[%s2070_s27 + $0x20] sm:$0xff] %vm963_vm8, %v945_v28  ;;  %v1497_v29 = vpop.f32.mrb[14].mxu0 }
 0x2c5   : > { %v960_v30 = vadd.f32 %v1497_v29, %v829_v16  ;;  %v954_v31 = vpop.f32.mrb[15].mxu0 }
 0x2c6   : > { %v955_v32 = vadd.f32 %v954_v31, %v829_v16 }
 0x2c7   : > { %971 = vst.msk [vmem:[%s2070_s27 + $0x38] sm:$0xff] %vm963_vm8, %v960_v30 }
 0x2c8   : > { %970 = vst.msk [vmem:[%s2070_s27 + $0x30] sm:$0xff] %vm963_vm8, %v955_v32 }
 0x2c9   : > { %s2168_s29 = smov (!%p981_p8, %s980_s29), 8 }
 0x2ca   : > { %s1262_s15 = sshll.u32 %s2168_s29, 7 }
 0x2cb   : > { %p1265_p9 = scmp.eq.s32.totalorder %s1262_s15, 0 }
 0x2cc   : > { %s2101_s16 = sshrl.u32 (!%p1265_p9), %s2168_s29, 3 }
 0x2cd   : > { %989 = sbr.rel (%p1265_p9) target bundleno = 762 (0x2fa), region = 60  ;;  %p1266_p10 = scmp.le.s32.totalorder (!%p1265_p9), %s2101_s16, 0 }
 0x2d4   : > { %1171 = sbr.rel (%p1266_p10) target bundleno = 741 (0x2e5), region = 136  ;;  %s2161_s7 = smov (!%p1266_p10), %s2095_s12 }
 0x2d5   : > { %s2162_s14 = smov (!%p1266_p10), %s2070_s27  ;;  %s2110_s21 = smov (!%p1266_p10), 0  }
 0x2d6   : > { %s2112_s17 = smov (!%p1266_p10), 0  }
 0x2db LB: >> { %v1065_v33 = vld [vmem:[%s1757_s14] sm:$0xff]  ;;  %v1067_v34 = vld [vmem:[%s1757_s14 + $0x8] sm:$0xff]  ;;  %v1069_v35 = vld [vmem:[%s1757_s14 + $0x10] sm:$0xff]  ;;  %s1081_s18 = sadd.s32 1, %s1761_s21  ;;  %s1059_s17 = sadd.s32 1, %s1765_s17   ;;  %s1765_s17 = sphi %s2112_s17, %s1059_s17   ;;  %s1761_s21 = sphi %s2110_s21, %s2163_s21   ;;  %s1757_s14 = sphi %s2162_s14, %s1086_s14   ;;  %s1753_s7 = sphi %s2161_s7, %s1087_s7  }
 0x2dc   : >> { %1066 = vst [vmem:[%s1753_s7] sm:$0xff] %v1065_v33  ;;  %1068 = vst [vmem:[%s1753_s7 + $0x8] sm:$0xff] %v1067_v34  ;;  %v1071_v36 = vld [vmem:[%s1757_s14 + $0x18] sm:$0xff]  ;;  %v1073_v37 = vld [vmem:[%s1757_s14 + $0x20] sm:$0xff]  ;;  %p1082_p11 = scmp.ge.s32.totalorder %s1081_s18, %s2101_s16  ;;  %p1058_p12 = scmp.ge.s32.totalorder %s1059_s17, %s2101_s16 }
 0x2dd   : >> { %1070 = vst [vmem:[%s1753_s7 + $0x10] sm:$0xff] %v1069_v35  ;;  %v1075_v38 = vld [vmem:[%s1757_s14 + $0x28] sm:$0xff]  ;;  %1072 = vst [vmem:[%s1753_s7 + $0x18] sm:$0xff] %v1071_v36  ;;  %v1077_v39 = vld [vmem:[%s1757_s14 + $0x30] sm:$0xff] }
 0x2de   : >> { %1074 = vst [vmem:[%s1753_s7 + $0x20] sm:$0xff] %v1073_v37  ;;  %1076 = vst [vmem:[%s1753_s7 + $0x28] sm:$0xff] %v1075_v38  ;;  %v1079_v40 = vld [vmem:[%s1757_s14 + $0x38] sm:$0xff]  ;;  %s2170_s18 = smov (%p1082_p11, %s1081_s18), 0  ;;  %1061 = sbr.rel (!%p1058_p12) target bundleno = 731 (0x2db), region = 142 }
 0x2df   : >> { %1078 = vst [vmem:[%s1753_s7 + $0x30] sm:$0xff] %v1077_v39  ;;  %1080 = vst [vmem:[%s1753_s7 + $0x38] sm:$0xff] %v1079_v40  ;;  %s1267_s19 = sshll.u32 %s2170_s18, 6  ;;  %s2163_s21 = smov %s2170_s18 }
 0x2e0   : >> { %s1086_s14 = scalar_lea.vmem %s2070_s27, %s1267_s19 [#allocation3]   ;;  %s1087_s7 = scalar_lea.vmem %s2095_s12, %s1267_s19  }
 0x2e5 PF: > { %s2131_s20 = sand.u32 7, %s2168_s29   ;;  %s1278_s23 = sshll.u32 %s2101_s16, 6 }
 0x2e6   : > { %s1092_s24 = scalar_lea.vmem %s2070_s27, %s1278_s23 [#allocation3]   ;;  %s1094_s22 = scalar_lea.vmem %s2095_s12, %s1278_s23  }
 0x2e7   : > { %p1272_p13 = scmp.le.s32.totalorder %s2131_s20, 0 }
 0x2e8   : > { %s1767_s25 = smov (!%p1272_p13), %s1094_s22   ;;  %s1771_s26 = smov (!%p1272_p13), %s1092_s24  }
 0x2e9   : > { %1185 = sbr.rel (%p1272_p13) target bundleno = 762 (0x2fa), region = 147  ;;  %s1775_s28 = smov (!%p1272_p13), 0  }
 0x2ea   : > { %s1779_s9 = smov (!%p1272_p13), 0  }
 0x2f0 LB: >> { %v1104_v41 = vld [vmem:[%s1773_s26] sm:$0xff]  ;;  %s1106_s29 = sadd.s32 1, %s1777_s28  ;;  %s1098_s9 = sadd.s32 1, %s1781_s9   ;;  %s1781_s9 = sphi %s1779_s9, %s1098_s9   ;;  %s1777_s28 = sphi %s1775_s28, %s1776_s28   ;;  %s1773_s26 = sphi %s1771_s26, %s1111_s26   ;;  %s1769_s25 = sphi %s1767_s25, %s1112_s25  }
 0x2f1   : >> { %1105 = vst [vmem:[%s1769_s25] sm:$0xff] %v1104_v41  ;;  %p1107_p0 = scmp.ge.s32.totalorder %s1106_s29, %s2131_s20  ;;  %p1097_p1 = scmp.ge.s32.totalorder %s1098_s9, %s2131_s20 }
 0x2f3   : >> { %s2172_s29 = smov (%p1107_p0, %s1106_s29), 0  ;;  %1100 = sbr.rel (!%p1097_p1) target bundleno = 752 (0x2f0), region = 153 }
 0x2f4   : >> { %s1273_s27 = sshll.u32 %s2172_s29, 3  ;;  %s1776_s28 = smov %s2172_s29  }
 0x2f5   : >> { %s1111_s26 = scalar_lea.vmem %s1092_s24, %s1273_s27 [#allocation3]   ;;  %s1112_s25 = scalar_lea.vmem %s1094_s22, %s1273_s27  }
 0x2fa PF: > { %p16_p2 = scmp.ge.s32.totalorder %s1847_s10, 6   ;;  %s2164_s29 = smov %s1745_s30 }
 0x2fb   : > { %s2165_s30 = smov %s1855_s13  ;;  %s2166_s9 = smov %s1847_s10 }
 0x2fc   :  { %18 = sbr.rel (!%p16_p2) target bundleno = 4 (0x4), region = 164 }

</bundles_post_ra>
